<compile_context>
chip_gen: v7x
topology: tpu7x:2x2x1
jax: 0.10.0
libtpu: 0.0.40
codegen_flags: <defaults>
</compile_context>

<pallas_src>
import functools
import math

import jax
import jax.numpy as jnp
from jax.experimental import pallas as pl
from jax.experimental.pallas import tpu as pltpu

# Flip to jnp.bfloat16 for ~4-5x MXU throughput and half the weight DMA bytes, at a
# precision cost on the matmul inputs (accumulation stays float32 either way).
COMPUTE_DTYPE = jnp.float32

_MIB = 1024 * 1024
_FUSE_VMEM_BUDGET = 24 * _MIB  # conservative budget for the whole-MLP fused path


def _round_up(x: int, m: int) -> int:
    return ((x + m - 1) // m) * m


def _pick_tile(dim: int, cap: int, align: int) -> int:
    """Largest divisor of `dim` that is a multiple of `align` and <= cap.

    `dim` is always a multiple of `align` (we pad to hardware granularity), so this
    terminates with at least `align`. Picking a divisor avoids padding to the tile.
    """
    cap = max(align, min(cap, dim))
    t = cap - cap % align
    while t >= align:
        if dim % t == 0:
            return t
        t -= align
    return align


def _vmem_limit_bytes(need_bytes: int) -> int:
    """Generation-aware VMEM limit: enough for the working set + headroom, but never
    the whole physical VMEM (64 MiB on a v7x TensorCore)."""
    try:
        cap = pltpu.get_tpu_info().vmem_capacity_bytes
    except Exception:  # conservative fallback: v7x per-TensorCore VMEM
        cap = 64 * _MIB
    limit = max(32 * _MIB, int(need_bytes * 1.5))
    return int(min(limit, int(cap * 0.75)))


# ---------------------------------------------------------------------------------
# Tiled per-layer kernel (fallback path for MLPs too large to fuse in VMEM).
# ---------------------------------------------------------------------------------
def _linear_relu_kernel(x_ref, w_ref, b_ref, o_ref, *, apply_relu: bool):
    """One (tm, tn) tile of y = relu(x @ w + b), reduced over the K grid axis.

    The output block index (i, j) is k-invariant, so o_ref stays resident in VMEM
    across the reduction axis and doubles as the f32 accumulator (no scratch buffer).
    The bias is folded into the k == 0 init.
    """
    k = pl.program_id(2)

    @pl.when(k == 0)
    def _():
        o_ref[...] = jnp.broadcast_to(b_ref[...].astype(jnp.float32), o_ref.shape)

    x = x_ref[...].astype(w_ref.dtype)  # no-op for f32; bf16 cast if COMPUTE_DTYPE=bf16
    o_ref[...] += jnp.dot(x, w_ref[...], preferred_element_type=jnp.float32)

    @pl.when(k == pl.num_programs(2) - 1)
    def _():
        if apply_relu:
            o_ref[...] = jnp.maximum(o_ref[...], 0.0)


def fused_linear_padded(x_p, wt_p, b_p, *, apply_relu=True,
                        tm_cap=512, tn_cap=512, tk_cap=1024):
    """y_p = relu(x_p @ wt_p + b_p) on already (8,128)-padded operands.

    x_p: (Mp, Kp) float32, wt_p: (Kp, Np) COMPUTE_DTYPE, b_p: (1, Np) float32.
    Returns the padded (Mp, Np) float32 output (no slicing -- layers chain padded).
    """
    Mp, Kp = x_p.shape
    Kp2, Np = wt_p.shape
    assert Kp == Kp2, "padded in_features mismatch"

    tm = _pick_tile(Mp, tm_cap, 8)
    tn = _pick_tile(Np, tn_cap, 128)
    tk = _pick_tile(Kp, tk_cap, 128)
    # v7x has 2 TensorCores sharded over "parallel" grid axes: if the (i, j) grid
    # collapsed to a single block, split N (or M) so both cores get work.
    if (Mp // tm) * (Np // tn) < 2:
        if Np >= 256:
            tn = _pick_tile(Np, Np // 2, 128)
        elif Mp >= 16:
            tm = _pick_tile(Mp, Mp // 2, 8)

    grid = (Mp // tm, Np // tn, Kp // tk)
    x_elt = x_p.dtype.itemsize
    w_elt = wt_p.dtype.itemsize
    # Double-buffered x / w / bias tiles + resident f32 output/accumulator tiles.
    need = 2 * (tm * tk * x_elt + tk * tn * w_elt + tn * 4) + 2 * tm * tn * 4

    return pl.pallas_call(
        functools.partial(_linear_relu_kernel, apply_relu=apply_relu),
        out_shape=jax.ShapeDtypeStruct((Mp, Np), jnp.float32),
        grid_spec=pltpu.PrefetchScalarGridSpec(
            num_scalar_prefetch=0,
            grid=grid,
            in_specs=[
                # On v5e (lowest HBM BW), consider pipeline_mode=pl.Buffered(3) here
                # if the DMA is still exposed after the larger tiles.
                pl.BlockSpec((tm, tk), lambda i, j, k: (i, k)),   # x tile
                pl.BlockSpec((tk, tn), lambda i, j, k: (k, j)),   # W^T tile
                pl.BlockSpec((1, tn), lambda i, j, k: (0, j)),    # bias tile
            ],
            out_specs=pl.BlockSpec((tm, tn), lambda i, j, k: (i, j)),
        ),
        compiler_params=pltpu.CompilerParams(
            dimension_semantics=("parallel", "parallel", "arbitrary"),
            vmem_limit_bytes=_vmem_limit_bytes(need),
        ),
    )(x_p, wt_p, b_p)


# ---------------------------------------------------------------------------------
# Whole-MLP fused kernel (single pallas_call, used when everything fits in VMEM).
# ---------------------------------------------------------------------------------
def _fused_mlp_kernel(*refs, num_layers: int, apply_relu_last: bool = True):
    x_ref = refs[0]
    o_ref = refs[-1]
    h = x_ref[...].astype(jnp.float32)
    for l in range(num_layers):
        w_ref = refs[1 + 2 * l]
        b_ref = refs[2 + 2 * l]
        y = jnp.dot(h.astype(w_ref.dtype), w_ref[...],
                    preferred_element_type=jnp.float32)
        y = y + b_ref[...].astype(jnp.float32)
        if apply_relu_last or l < num_layers - 1:
            y = jnp.maximum(y, 0.0)
        h = y
    o_ref[...] = h.astype(o_ref.dtype)


def _fused_mlp_call(x_p, layers):
    Mp = x_p.shape[0]
    Np_last = layers[-1][0].shape[1]

    args = [x_p]
    in_specs = [pl.BlockSpec(x_p.shape, lambda i: (0, 0))]
    for (wt_p, b_p, _, _) in layers:
        args.extend([wt_p, b_p])
        in_specs.append(pl.BlockSpec(wt_p.shape, lambda i: (0, 0)))
        in_specs.append(pl.BlockSpec(b_p.shape, lambda i: (0, 0)))

    dmax = max(max(w.shape) for (w, _, _, _) in layers)
    need = (sum(int(a.size) * a.dtype.itemsize for a in args)
            + Mp * dmax * 4 + Mp * Np_last * 4) * 2

    return pl.pallas_call(
        functools.partial(_fused_mlp_kernel, num_layers=len(layers),
                          apply_relu_last=True),
        out_shape=jax.ShapeDtypeStruct((Mp, Np_last), jnp.float32),
        grid_spec=pltpu.PrefetchScalarGridSpec(
            num_scalar_prefetch=0,
            grid=(1,),
            in_specs=in_specs,
            out_specs=pl.BlockSpec((Mp, Np_last), lambda i: (0, 0)),
        ),
        compiler_params=pltpu.CompilerParams(
            dimension_semantics=("arbitrary",),
            vmem_limit_bytes=_vmem_limit_bytes(need),
        ),
    )(*args)


def _can_fuse(Mp, layers) -> bool:
    w_bytes = sum(int(w.size) * w.dtype.itemsize + int(b.size) * b.dtype.itemsize
                  for (w, b, _, _) in layers)
    dmax = max(max(w.shape) for (w, _, _, _) in layers)
    act_bytes = 3 * Mp * dmax * 4  # x in, intermediate h, out (f32)
    return 2 * (w_bytes + act_bytes) <= _FUSE_VMEM_BUDGET


# ---------------------------------------------------------------------------------
# Parameter construction / preparation and MLP forward.
# ---------------------------------------------------------------------------------
def init_mlp_params(key, size_per_layer):
    """PyTorch-style init: weight, bias ~ U(-1/sqrt(in), 1/sqrt(in)) per layer.
    Weights are stored PyTorch-layout: (out_features, in_features)."""
    params = []
    for i in range(1, len(size_per_layer)):
        in_size, out_size = size_per_layer[i - 1], size_per_layer[i]
        stdv = 1.0 / math.sqrt(in_size)
        key, kw, kb = jax.random.split(key, 3)
        w = jax.random.uniform(kw, (out_size, in_size), jnp.float32,
                               minval=-stdv, maxval=stdv)
        b = jax.random.uniform(kb, (out_size,), jnp.float32,
                               minval=-stdv, maxval=stdv)
        params.append((w, b))
    return params


def prepare_mlp_params(params, compute_dtype=None):
    """One-time layout prep (do NOT repeat per forward):
    transpose each weight to (K, N), pad K/N up to multiples of 128, cast to the
    compute dtype; pad each bias to (1, Np) float32.
    Returns a list of (wt_padded, bias_padded, K_real, N_real)."""
    compute_dtype = COMPUTE_DTYPE if compute_dtype is None else compute_dtype
    prepared = []
    for (w, b) in params:
        N, K = w.shape
        Kp, Np = _round_up(K, 128), _round_up(N, 128)
        wt = jnp.pad(w.T.astype(compute_dtype), ((0, Kp - K), (0, Np - N)))
        bp = jnp.pad(b.astype(jnp.float32), (0, Np - N)).reshape(1, Np)
        prepared.append((wt, bp, K, N))
    return prepared


def mlp_forward(x, prepared_layers):
    """MLP forward. output='normal' => ReLU applied after every layer (incl. the last).

    Accepts [batch] x ... x [in_features]; leading dims are flattened for the kernel.
    """
    lead = x.shape[:-1]
    h = x.reshape(-1, x.shape[-1]).astype(jnp.float32)
    M, K0 = h.shape
    assert K0 == prepared_layers[0][2], "input feature size mismatch"
    K0p = prepared_layers[0][0].shape[0]
    N_last = prepared_layers[-1][3]

    Mp = _round_up(M, 8)
    if (Mp, K0p) != (M, K0):
        h_p = jnp.pad(h, ((0, Mp - M), (0, K0p - K0)))
    else:
        h_p = h

    if _can_fuse(Mp, prepared_layers):
        # One kernel launch for the whole MLP; no intermediate HBM round trips.
        out_p = _fused_mlp_call(h_p, prepared_layers)
    else:
        # Tiled per-layer path; chain on the padded activation, slice only at the end.
        for (wt_p, b_p, _, _) in prepared_layers:
            h_p = fused_linear_padded(h_p, wt_p, b_p, apply_relu=True)
        out_p = h_p

    return out_p[:M, :N_last].reshape(*lead, N_last)


if __name__ == "__main__":
    key = jax.random.PRNGKey(0)
    kx, kp = jax.random.split(key)

    # Shapes consistent with MLP(input_size, output_size, layers=2, hid_size):
    # size_per_layer = [input_size, hid_size, output_size]
    batch, input_size, hid_size, output_size = 2, 32, 32, 10
    size_per_layer = [input_size, hid_size, output_size]

    x = jax.random.normal(kx, (batch, input_size), dtype=jnp.float32)
    raw_params = init_mlp_params(kp, size_per_layer)
    prepared = prepare_mlp_params(raw_params)  # one-time transpose/pad/cast

    # Fused whole-MLP path (used automatically for these small shapes).
    out = mlp_forward(x, prepared)
    out = jax.block_until_ready(out)

    # Pure-JAX reference (PyTorch MLP with default args: no dropout/bn/gate/phantom,
    # excitability=None, ReLU on every layer including the last since output='normal').
    ref = x
    for (w, b) in raw_params:
        ref = jnp.maximum(ref @ w.T + b, 0.0)

    assert out.shape == (batch, output_size)
    assert jnp.allclose(out, ref, atol=1e-5, rtol=1e-5), "fused path mismatch vs ref"

    # Also exercise the tiled per-layer kernel (the path used when the MLP is too big
    # to fuse entirely in VMEM), chaining padded activations.
    Mp, K0p = _round_up(batch, 8), _round_up(input_size, 128)
    h_p = jnp.pad(x, ((0, Mp - batch), (0, K0p - input_size)))
    for (wt_p, b_p, _, _) in prepared:
        h_p = fused_linear_padded(h_p, wt_p, b_p, apply_relu=True)
    out_tiled = jax.block_until_ready(h_p[:batch, :output_size])
    assert jnp.allclose(out_tiled, ref, atol=1e-5, rtol=1e-5), "tiled path mismatch"

    print("KERNEL_OK")
</pallas_src>

<mosaic_0001>
module attributes {stable_mosaic.version = 11 : i64} {
  func.func @_fused_mlp_kernel(%arg0: i32, %arg1: memref<8x128xf32, #tpu.memory_space<vmem>>, %arg2: memref<128x128xf32, #tpu.memory_space<vmem>>, %arg3: memref<1x128xf32, #tpu.memory_space<vmem>>, %arg4: memref<128x128xf32, #tpu.memory_space<vmem>>, %arg5: memref<1x128xf32, #tpu.memory_space<vmem>>, %arg6: memref<8x128xf32, #tpu.memory_space<vmem>>) attributes {dimension_semantics = [#tpu.dimension_semantics<arbitrary>], iteration_bounds = array<i64: 1>, scalar_prefetch = 0 : i64, scratch_operands = 0 : i64, tpu.core_type = #tpu.core_type<tc>, window_params = [{pipeline_mode = #tpu.pipeline_mode<synchronous>, transform_indices = @transform_0, window_bounds = array<i64: 8, 128>}, {pipeline_mode = #tpu.pipeline_mode<synchronous>, transform_indices = @transform_1, window_bounds = array<i64: 128, 128>}, {pipeline_mode = #tpu.pipeline_mode<synchronous>, transform_indices = @transform_2, window_bounds = array<i64: 1, 128>}, {pipeline_mode = #tpu.pipeline_mode<synchronous>, transform_indices = @transform_3, window_bounds = array<i64: 128, 128>}, {pipeline_mode = #tpu.pipeline_mode<synchronous>, transform_indices = @transform_4, window_bounds = array<i64: 1, 128>}, {pipeline_mode = #tpu.pipeline_mode<synchronous>, transform_indices = @transform_5, window_bounds = array<i64: 8, 128>}]} {
    %c0 = arith.constant 0 : index
    %c0_0 = arith.constant 0 : index
    %0 = vector.load %arg1[%c0, %c0_0] : memref<8x128xf32, #tpu.memory_space<vmem>>, vector<8x128xf32>
    %c0_1 = arith.constant 0 : index
    %c0_2 = arith.constant 0 : index
    %1 = vector.load %arg2[%c0_1, %c0_2] : memref<128x128xf32, #tpu.memory_space<vmem>>, vector<128x128xf32>
    %cst = arith.constant dense<0.000000e+00> : vector<8x128xf32>
    %2 = tpu.matmul %0, %1, %cst {dimension_numbers = #tpu.dot_dimension_numbers<[1], [0], [0], [1], [0, 0, 1, 1], [], []>} : vector<8x128xf32>, vector<128x128xf32>, vector<8x128xf32> -> vector<8x128xf32>
    %c0_3 = arith.constant 0 : index
    %c0_4 = arith.constant 0 : index
    %3 = vector.load %arg3[%c0_3, %c0_4] : memref<1x128xf32, #tpu.memory_space<vmem>>, vector<1x128xf32>
    %4 = vector.broadcast %3 : vector<1x128xf32> to vector<8x128xf32>
    %5 = arith.addf %2, %4 : vector<8x128xf32>
    %cst_5 = arith.constant 0.000000e+00 : f32
    %6 = vector.broadcast %cst_5 : f32 to vector<8x128xf32>
    %7 = arith.maximumf %5, %6 : vector<8x128xf32>
    %c0_6 = arith.constant 0 : index
    %c0_7 = arith.constant 0 : index
    %8 = vector.load %arg4[%c0_6, %c0_7] : memref<128x128xf32, #tpu.memory_space<vmem>>, vector<128x128xf32>
    %cst_8 = arith.constant dense<0.000000e+00> : vector<8x128xf32>
    %9 = tpu.matmul %7, %8, %cst_8 {dimension_numbers = #tpu.dot_dimension_numbers<[1], [0], [0], [1], [0, 0, 1, 1], [], []>} : vector<8x128xf32>, vector<128x128xf32>, vector<8x128xf32> -> vector<8x128xf32>
    %c0_9 = arith.constant 0 : index
    %c0_10 = arith.constant 0 : index
    %10 = vector.load %arg5[%c0_9, %c0_10] : memref<1x128xf32, #tpu.memory_space<vmem>>, vector<1x128xf32>
    %11 = vector.broadcast %10 : vector<1x128xf32> to vector<8x128xf32>
    %12 = arith.addf %9, %11 : vector<8x128xf32>
    %cst_11 = arith.constant 0.000000e+00 : f32
    %13 = vector.broadcast %cst_11 : f32 to vector<8x128xf32>
    %14 = arith.maximumf %12, %13 : vector<8x128xf32>
    %c0_12 = arith.constant 0 : index
    %c0_13 = arith.constant 0 : index
    %15 = vector.load %arg6[%c0_12, %c0_13] : memref<8x128xf32, #tpu.memory_space<vmem>>, vector<8x128xf32>
    tpu.vector_store %arg6[%c0_12, %c0_13], %14 {strides = array<i32>} : memref<8x128xf32, #tpu.memory_space<vmem>>, vector<8x128xf32>,
    return
  }
  func.func @transform_0(%arg0: i32) -> (i32, i32) {
    %c0_i32 = arith.constant 0 : i32
    %c0_i32_0 = arith.constant 0 : i32
    %c0_i32_1 = arith.constant 0 : i32
    return %c0_i32, %c0_i32_0 : i32, i32
  }
  func.func @transform_1(%arg0: i32) -> (i32, i32) {
    %c0_i32 = arith.constant 0 : i32
    %c0_i32_0 = arith.constant 0 : i32
    %c0_i32_1 = arith.constant 0 : i32
    return %c0_i32, %c0_i32_0 : i32, i32
  }
  func.func @transform_2(%arg0: i32) -> (i32, i32) {
    %c0_i32 = arith.constant 0 : i32
    %c0_i32_0 = arith.constant 0 : i32
    %c0_i32_1 = arith.constant 0 : i32
    return %c0_i32, %c0_i32_0 : i32, i32
  }
  func.func @transform_3(%arg0: i32) -> (i32, i32) {
    %c0_i32 = arith.constant 0 : i32
    %c0_i32_0 = arith.constant 0 : i32
    %c0_i32_1 = arith.constant 0 : i32
    return %c0_i32, %c0_i32_0 : i32, i32
  }
  func.func @transform_4(%arg0: i32) -> (i32, i32) {
    %c0_i32 = arith.constant 0 : i32
    %c0_i32_0 = arith.constant 0 : i32
    %c0_i32_1 = arith.constant 0 : i32
    return %c0_i32, %c0_i32_0 : i32, i32
  }
  func.func @transform_5(%arg0: i32) -> (i32, i32) {
    %c0_i32 = arith.constant 0 : i32
    %c0_i32_0 = arith.constant 0 : i32
    %c0_i32_1 = arith.constant 0 : i32
    return %c0_i32, %c0_i32_0 : i32, i32
  }
}

</mosaic_0001>

<bundles_post_ra>
// kernel: tpu_custom_call.1
= control target key start
LH: loop header
LB: loop body
LE: loop exit
PB: predicated region body
PF: predicated region fallthrough
CT: control target
= control target key end

     0   :  { %10 = vsyncpa [#allocation3], 0  ;;  %s638_s0 = inlined_call_operand.hbm [shape: f32[8,128], index: 0, kind: input, shape index: {}]   ;;  %s639_s1 = inlined_call_operand.hbm [shape: f32[128,128], index: 1, kind: input, shape index: {}]   ;;  %s640_s2 = inlined_call_operand.vmem [shape: f32[1,128], index: 2, kind: input, shape index: {}]   ;;  %s641_s3 = inlined_call_operand.hbm [shape: f32[128,128], index: 3, kind: input, shape index: {}]   ;;  %s642_s4 = inlined_call_operand.vmem [shape: f32[1,128], index: 4, kind: input, shape index: {}]   ;;  %s643_s5 = inlined_call_operand.hbm [shape: f32[8,128], index: 5, kind: output, shape index: {}]  }
   0x1   :  { %11 = vsyncpa [#allocation6], 0 }
   0x2   :  { %12 = vsyncpa [#allocation4], 0  ;;  %s523_s18 = smov [#allocation5]   ;;  %s429_s22 = scalar_lea.hbm %s639_s1, 2048 }
   0x3   :  { %s28_s19 = sshll.u32 %s523_s18, 4  ;;  %p430_p0 = scmp.ne.s32.totalorder %s639_s1, %s429_s22  ;;  %s29_s19 = int_to_ptr.vmem [resolvable:$true] %s28_s19 }
   0x4   :  { %p433_p1 = scmp.lt.u32.totalorder %s429_s22, %s639_s1 }
   0x6   :  { %p435_p2 = pnand %p433_p1, %p430_p0 }
   0x8   :  { %438 = shalt.err (!%p435_p2)
}
   0x9   :  { %s439_s27 = scalar_lea.vmem %s29_s19, 2048  ;;  %p444_p4 = scmp.lt.s32.totalorder %s29_s19, %s29_s19 }
   0xa   :  { %p440_p3 = scmp.ne.s32.totalorder %s29_s19, %s439_s27  ;;  %p445_p5 = scmp.lt.s32.totalorder %s439_s27, %s439_s27 }
   0xc   :  { %p446_p6 = por %p445_p5, %p444_p4 }
   0xe   :  { %p447_p7 = pnand %p446_p6, %p440_p3 }
  0x10   :  { %450 = shalt.err (!%p447_p7)
}
  0x11   :  { %s524_s28 = smov 128   ;;  %s525_s29 = smov 8  }
  0x12   :  { %34 = dma.hbm_to_vmem [thread:$0]  %s639_s1, 2048, %s29_s19, [#allocation6], %s524_s28, %s524_s28, %s525_s29  }
  0x13   :  { %s526_s7 = smov [#allocation2]   ;;  %s527_s9 = smov [#allocation7]  }
  0x14   :  { %s19_s8 = sshll.u32 %s526_s7, 4  ;;  %s42_s10 = sshll.u32 %s527_s9, 4  ;;  %s20_s8 = int_to_ptr.vmem [resolvable:$true] %s19_s8  ;;  %s43_s10 = int_to_ptr.vmem [resolvable:$true] %s42_s10 }
  0x15   :  { %s451_s13 = scalar_lea.hbm %s638_s0, 128 }
  0x16   :  { %p452_p8 = scmp.ne.s32.totalorder %s638_s0, %s451_s13  ;;  %p455_p9 = scmp.lt.u32.totalorder %s451_s13, %s638_s0 }
  0x18   :  { %p457_p10 = pnand %p455_p9, %p452_p8 }
  0x1a   :  { %460 = shalt.err (!%p457_p10)
}
  0x1b   :  { %s461_s1 = scalar_lea.vmem %s20_s8, 128  ;;  %p466_p12 = scmp.lt.s32.totalorder %s20_s8, %s20_s8 }
  0x1c   :  { %p462_p11 = scmp.ne.s32.totalorder %s20_s8, %s461_s1  ;;  %p467_p13 = scmp.lt.s32.totalorder %s461_s1, %s461_s1 }
  0x1e   :  { %p468_p0 = por %p467_p13, %p466_p12 }
  0x20   :  { %p469_p1 = pnand %p468_p0, %p462_p11 }
  0x22   :  { %472 = shalt.err (!%p469_p1)
}
  0x23   :  { %22 = dma.hbm_to_vmem [thread:$0]  %s638_s0, 128, %s20_s8, [#allocation3]  }
  0x24   :  { %s473_s22 = scalar_lea.hbm %s641_s3, 2048 }
  0x25   :  { %p474_p2 = scmp.ne.s32.totalorder %s641_s3, %s473_s22  ;;  %p477_p3 = scmp.lt.u32.totalorder %s473_s22, %s641_s3 }
  0x27   :  { %p479_p4 = pnand %p477_p3, %p474_p2 }
  0x29   :  { %482 = shalt.err (!%p479_p4)
}
  0x2a   :  { %s483_s27 = scalar_lea.vmem %s43_s10, 2048  ;;  %p488_p6 = scmp.lt.s32.totalorder %s43_s10, %s43_s10 }
  0x2b   :  { %p484_p5 = scmp.ne.s32.totalorder %s43_s10, %s483_s27  ;;  %p489_p7 = scmp.lt.s32.totalorder %s483_s27, %s483_s27 }
  0x2d   :  { %p490_p8 = por %p489_p7, %p488_p6 }
  0x2f   :  { %p491_p9 = pnand %p490_p8, %p484_p5 }
  0x31   :  { %494 = shalt.err (!%p491_p9)
}
  0x32   :  { %48 = dma.hbm_to_vmem [thread:$0]  %s641_s3, 2048, %s43_s10, [#allocation6], %s524_s28, %s524_s28, %s525_s29  }
  0x33   :  { %517 = dma.done.wait [#allocation3], 128  }
  0x34   :  { %518 = vsyncadd [#allocation3], 4294967168 }
  0x35   :  { %519 = dma.done.wait [#allocation6], 4096  }
  0x36   :  { %520 = vsyncadd [#allocation6], 4294963200  ;;  %v528_v0 = vmov 0.0|0.0   ;;  %vm529_vm0 = vmmov 0   ;;  %v530_v1 = vmov 0.0   ;;  %v61_v2 = vld [vmem:[#allocation5] sm:$0xff] }
  0x37   :  { %372 = vmatprep.subr.bf16.mxu0 %v528_v0  ;;  %334 = vmatprep.mubr.msk.f32.mxu0 %vm529_vm0, %v530_v1  ;;  %v62_v3 = vld [vmem:[#allocation5 + $0x8] sm:$0xff]  ;;  %v63_v4 = vld [vmem:[#allocation5 + $0x10] sm:$0xff]  ;;  %v64_v6 = vld [vmem:[#allocation5 + $0x18] sm:$0xff]  ;;  %s531_s7 = smov [#allocation8]  }
  0x38   :  { %396 = vmatprep.subr.bf16.mxu1 %v528_v0  ;;  %369 = vmatprep.mubr.msk.f32.mxu1 %vm529_vm0, %v530_v1  ;;  %v373_v5 = vpack.c.bf16 %v62_v3, %v61_v2  ;;  %v376_v7 = vpack.c.bf16 %v64_v6, %v63_v4  ;;  %v65_v8 = vld [vmem:[#allocation5 + $0x20] sm:$0xff]  ;;  %v66_v9 = vld [vmem:[#allocation5 + $0x28] sm:$0xff]  ;;  %v157_v12 = vld [vmem:[#allocation7 + $0x10] sm:$0xff]  ;;  %s256_s8 = sshll.u32 %s531_s7, 4  ;;  %s257_s8 = int_to_ptr.vmem [resolvable:$true] %s256_s8 }
  0x39   :  { %v155_v10 = vld [vmem:[#allocation7] sm:$0xff]  ;;  %v156_v11 = vld [vmem:[#allocation7 + $0x8] sm:$0xff]  ;;  %v158_v13 = vld [vmem:[#allocation7 + $0x18] sm:$0xff]  ;;  %v379_v14 = vpack.c.bf16 %v66_v9, %v65_v8  ;;  %s495_s9 = scalar_lea.vmem %s257_s8, 128  ;;  %p500_p11 = scmp.lt.s32.totalorder %s257_s8, %s257_s8 }
  0x3a   :  { %374 = vmatpush3.bf16.msra.mxu0 %v373_v5  ;;  %v397_v15 = vpack.c.bf16 %v156_v11, %v155_v10  ;;  %v67_v16 = vld [vmem:[#allocation5 + $0x30] sm:$0xff]  ;;  %v68_v17 = vld [vmem:[#allocation5 + $0x38] sm:$0xff]  ;;  %v400_v18 = vpack.c.bf16 %v158_v13, %v157_v12  ;;  %v159_v19 = vld [vmem:[#allocation7 + $0x20] sm:$0xff]  ;;  %p496_p10 = scmp.ne.s32.totalorder %s257_s8, %s495_s9  ;;  %p501_p12 = scmp.lt.s32.totalorder %s495_s9, %s495_s9 }
  0x3b   :  { %375 = vmatprep.subr.bf16.mxu0 %v528_v0  ;;  %v160_v20 = vld [vmem:[#allocation7 + $0x28] sm:$0xff]  ;;  %v382_v21 = vpack.c.bf16 %v68_v17, %v67_v16  ;;  %v69_v22 = vld [vmem:[#allocation5 + $0x40] sm:$0xff]  ;;  %v161_v25 = vld [vmem:[#allocation7 + $0x30] sm:$0xff] }
  0x3c   :  { %398 = vmatpush3.bf16.msra.mxu1 %v397_v15  ;;  %v70_v23 = vld [vmem:[#allocation5 + $0x48] sm:$0xff]  ;;  %v403_v24 = vpack.c.bf16 %v160_v20, %v159_v19  ;;  %v162_v26 = vld [vmem:[#allocation7 + $0x38] sm:$0xff]  ;;  %v71_v28 = vld [vmem:[#allocation5 + $0x50] sm:$0xff]  ;;  %p502_p13 = por %p501_p12, %p500_p11 }
  0x3d   :  { %399 = vmatprep.subr.bf16.mxu1 %v528_v0  ;;  %v385_v27 = vpack.c.bf16 %v70_v23, %v69_v22  ;;  %v72_v29 = vld [vmem:[#allocation5 + $0x58] sm:$0xff]  ;;  %v406_v30 = vpack.c.bf16 %v162_v26, %v161_v25  ;;  %v163_v31 = vld [vmem:[#allocation7 + $0x40] sm:$0xff]  ;;  %v164_v32 = vld [vmem:[#allocation7 + $0x48] sm:$0xff] }
  0x3e   :  { %377 = vmatpush3.bf16.msra.mxu0 %v376_v7  ;;  %v388_v33 = vpack.c.bf16 %v72_v29, %v71_v28  ;;  %v73_v34 = vld [vmem:[#allocation5 + $0x60] sm:$0xff]  ;;  %v74_v35 = vld [vmem:[#allocation5 + $0x68] sm:$0xff]  ;;  %v409_v36 = vpack.c.bf16 %v164_v32, %v163_v31  ;;  %v165_v37 = vld [vmem:[#allocation7 + $0x50] sm:$0xff]  ;;  %p503_p0 = pnand %p502_p13, %p496_p10 }
  0x3f   :  { %378 = vmatprep.subr.bf16.mxu0 %v528_v0  ;;  %v166_v38 = vld [vmem:[#allocation7 + $0x58] sm:$0xff]  ;;  %v391_v39 = vpack.c.bf16 %v74_v35, %v73_v34  ;;  %v75_v40 = vld [vmem:[#allocation5 + $0x70] sm:$0xff]  ;;  %v167_v43 = vld [vmem:[#allocation7 + $0x60] sm:$0xff] }
  0x40   :  { %401 = vmatpush3.bf16.msra.mxu1 %v400_v18  ;;  %v76_v41 = vld [vmem:[#allocation5 + $0x78] sm:$0xff]  ;;  %v412_v42 = vpack.c.bf16 %v166_v38, %v165_v37  ;;  %v168_v44 = vld [vmem:[#allocation7 + $0x68] sm:$0xff]  ;;  %v169_v48 = vld [vmem:[#allocation7 + $0x70] sm:$0xff] }
  0x41   :  { %402 = vmatprep.subr.bf16.mxu1 %v528_v0  ;;  %v394_v45 = vpack.c.bf16 %v76_v41, %v75_v40  ;;  %v415_v46 = vpack.c.bf16 %v168_v44, %v167_v43  ;;  %v60_v47 = vld [vmem:[#allocation2] sm:$0xff] }
  0x42   :  { %380 = vmatpush3.bf16.msra.mxu0 %v379_v14  ;;  %v170_v49 = vld [vmem:[#allocation7 + $0x78] sm:$0xff] }
  0x43   :  { %381 = vmatprep.subr.bf16.mxu0 %v528_v0  ;;  %v418_v50 = vpack.c.bf16 %v170_v49, %v169_v48  ;;  %v266_v51 = vld [vmem:[%s640_s2] ss:$0 sm:$0xff] }
  0x44   :  { %404 = vmatpush3.bf16.msra.mxu1 %v403_v24  ;;  %v267_v56 = vld [vmem:[%s642_s4] ss:$0 sm:$0xff] }
  0x45   :  { %405 = vmatprep.subr.bf16.mxu1 %v528_v0 }
  0x46   :  { %383 = vmatpush3.bf16.msra.mxu0 %v382_v21 }
  0x47   :  { %384 = vmatprep.subr.bf16.mxu0 %v528_v0 }
  0x48   :  { %407 = vmatpush3.bf16.msra.mxu1 %v406_v30 }
  0x49   :  { %408 = vmatprep.subr.bf16.mxu1 %v528_v0 }
  0x4a   :  { %386 = vmatpush3.bf16.msra.mxu0 %v385_v27 }
  0x4b   :  { %387 = vmatprep.subr.bf16.mxu0 %v528_v0 }
  0x4c   :  { %410 = vmatpush3.bf16.msra.mxu1 %v409_v36 }
  0x4d   :  { %411 = vmatprep.subr.bf16.mxu1 %v528_v0 }
  0x4e   :  { %389 = vmatpush3.bf16.msra.mxu0 %v388_v33 }
  0x4f   :  { %390 = vmatprep.subr.bf16.mxu0 %v528_v0 }
  0x50   :  { %413 = vmatpush3.bf16.msra.mxu1 %v412_v42 }
  0x51   :  { %414 = vmatprep.subr.bf16.mxu1 %v528_v0 }
  0x52   :  { %392 = vmatpush3.bf16.msra.mxu0 %v391_v39 }
  0x53   :  { %393 = vmatprep.subr.bf16.mxu0 %v528_v0 }
  0x54   :  { %416 = vmatpush3.bf16.msra.mxu1 %v415_v46 }
  0x55   :  { %417 = vmatprep.subr.bf16.mxu1 %v528_v0 }
  0x56   :  { %395 = vmatpush3.bf16.msra.mxu0 %v394_v45 }
  0x58   :  { %419 = vmatpush3.bf16.msra.mxu1 %v418_v50 }
  0x59   :  { %335 = vmatmul.mubr.f32.vlgmr.msra.gmra.mrb[0].mxu0 %v60_v47 }
 0x12c   :  { %v150_v52 = vpop.f32.mrb[0].mxu0 }
 0x12d   :  { %v151_v53 = vadd.f32 %v266_v51, %v150_v52  ;;  %v336_v54 = vpop.f32.mrb[1].mxu0 }
 0x12f   :  { %v154_v55 = vmax.f32 %v151_v53, 0.0 }
 0x131   :  { %370 = vmatmul.mubr.f32.vlgmr.msra.gmra.mrb[0].mxu1 %v154_v55 }
 0x204   :  { %v244_v57 = vpop.f32.mrb[0].mxu1 }
 0x205   :  { %v245_v58 = vadd.f32 %v267_v56, %v244_v57  ;;  %v371_v59 = vpop.f32.mrb[1].mxu1 }
 0x207   :  { %v248_v60 = vmax.f32 %v245_v58, 0.0 }
 0x209   :  { %249 = vst [vmem:[#allocation8] sm:$0xff] %v248_v60 }
 0x20a   :  { %506 = shalt.err (!%p503_p0)
}
 0x20b   :  { %s507_s11 = scalar_lea.hbm %s643_s5, 128 }
 0x20c   :  { %p508_p1 = scmp.ne.s32.totalorder %s643_s5, %s507_s11  ;;  %p511_p2 = scmp.lt.u32.totalorder %s507_s11, %s643_s5 }
 0x20e   :  { %p513_p3 = pnand %p511_p2, %p508_p1 }
 0x210   :  { %516 = shalt.err (!%p513_p3)
}
 0x211   :  { %259 = dma.vmem_to_hbm [thread:$0]  %s257_s8, 128, %s643_s5, [#allocation4]  }
 0x212   :  { %521 = dma.done.wait [#allocation4], 128  }
 0x213   :  { %522 = vsyncadd [#allocation4], 4294967168 }
 0x214   :  { %263 = vsyncpa [#allocation3], 1 }
 0x215   :  { %264 = vsyncpa [#allocation6], 1 }
 0x216   :  { %265 = vsyncpa [#allocation4], 1 }

</bundles_post_ra>
